<compile_context>
chip_gen: v6e
topology: v6e:2x2x1
jax: 0.10.0
libtpu: 0.0.40
codegen_flags: <defaults>
</compile_context>

<pallas_src>
import functools

import jax
import jax.numpy as jnp
from jax.experimental import pallas as pl
from jax.experimental.pallas import tpu as pltpu


def _head_kernel(x_ref, w_ref, b_ref, o_ref, acc_ref, *, inv_hw):
    """One (batch-tile, hw-tile) grid step.

    x_ref  : (tn, C, thw)  feature tile, native dtype
    w_ref  : (C, K_pad)    classifier weight (transposed, class-dim zero padded, f32)
    b_ref  : (1, K_pad)    classifier bias (f32, zero padded)
    o_ref  : (tn, K_pad)   logits tile
    acc_ref: (tn, C) f32   running spatial sum (VMEM scratch)
    """
    hw_idx = pl.program_id(1)

    @pl.when(hw_idx == 0)
    def _():
        acc_ref[...] = jnp.zeros_like(acc_ref)

    # Partial global-average-pool: accumulate spatial sums in f32 without
    # materializing an f32 copy of the whole feature tile.
    acc_ref[...] += jnp.sum(x_ref[...], axis=-1, dtype=jnp.float32)

    @pl.when(hw_idx == pl.num_programs(1) - 1)
    def _():
        pooled = acc_ref[...] * inv_hw                        # (tn, C) f32 == mean
        # Dropout(p=0.0) is the identity (ops.Identity branch in the module).
        logits = jnp.dot(pooled, w_ref[...],
                         preferred_element_type=jnp.float32)  # (tn, K_pad)
        logits = logits + b_ref[...]
        o_ref[...] = logits.astype(o_ref.dtype)


def _pick_hw_tile(hw, bytes_per_hw_elem, budget_bytes):
    # Whole spatial extent fits comfortably -> single block (no reduction loop).
    if hw * bytes_per_hw_elem <= budget_bytes:
        return hw
    # Otherwise: the largest multiple of 128 that divides hw and fits the budget
    # (partial blocks are not safe on a reduction axis).
    t = max(128, (budget_bytes // max(bytes_per_hw_elem, 1)) // 128 * 128)
    while t >= 128:
        if hw % t == 0:
            return int(t)
        t -= 128
    # Fallback: one large block covering the whole extent (correct; may be big).
    return hw


def _pick_batch_tile(n, c, hw, itemsize, budget_bytes):
    # Prefer a batch tile that divides n and fits the per-tile budget.
    for cand in (256, 128, 64, 32, 16, 8):
        if n % cand == 0 and cand * c * min(hw, 2048) * itemsize <= budget_bytes:
            return cand
    row_bytes = c * hw * itemsize
    if n * row_bytes <= budget_bytes:
        return n
    # Cap the tile; the batch axis is not a reduction axis, so a partial last
    # block (Pallas padding) is safe -- padded garbage rows never reach HBM.
    t = max(8, (budget_bytes // max(row_bytes, 1)) // 8 * 8)
    return int(min(max(t, 1), n))


def classification_head(features, weight, bias):
    """features: (N, C, H, W) NCHW; weight: (num_classes, C) (PyTorch Linear layout);
    bias: (num_classes,). Returns (N, num_classes) logits."""
    n, c, h, w = features.shape
    num_classes = weight.shape[0]
    hw = h * w
    itemsize = jnp.dtype(features.dtype).itemsize

    # Lane-dense, zero-padded class dimension (avoids masked partial stores);
    # weight transposed + cast to f32 once so the kernel finalize is a plain MXU dot.
    k_pad = max(128, ((num_classes + 127) // 128) * 128)
    w_pad = jnp.zeros((c, k_pad), jnp.float32).at[:, :num_classes].set(
        weight.T.astype(jnp.float32))
    b_pad = jnp.zeros((1, k_pad), jnp.float32).at[0, :num_classes].set(
        bias.astype(jnp.float32))

    # NCHW -> (N, C, H*W): reshape only, no transpose / no extra HBM pass.
    x_flat = features.reshape(n, c, hw)

    tile_budget = 4 << 20  # bytes per (single-buffered) input tile
    tn = _pick_batch_tile(n, c, hw, itemsize, tile_budget)
    thw = _pick_hw_tile(hw, tn * c * itemsize, tile_budget)
    grid = (pl.cdiv(n, tn), hw // thw if hw % thw == 0 else 1)

    # VMEM budget: double-buffered input tile + params + output + accumulator.
    vmem_needed = (2 * tn * c * thw * itemsize      # pipelined input tile
                   + 2 * c * k_pad * 4              # weight block (f32, buffered)
                   + 2 * k_pad * 4                  # bias block
                   + 2 * tn * k_pad * itemsize      # output tile
                   + tn * c * 4)                    # f32 accumulator scratch
    vmem_limit = int(min(max(vmem_needed + (4 << 20), 16 << 20), 48 << 20))

    cost = pl.CostEstimate(
        flops=n * c * hw + 2 * n * c * num_classes,
        transcendentals=0,
        bytes_accessed=(n * c * hw * itemsize
                        + c * k_pad * 4
                        + k_pad * 4
                        + n * k_pad * itemsize),
    )

    kernel = functools.partial(_head_kernel, inv_hw=float(1.0 / hw))

    out_padded = pl.pallas_call(
        kernel,
        out_shape=jax.ShapeDtypeStruct((n, k_pad), features.dtype),
        grid=grid,
        in_specs=[
            pl.BlockSpec((tn, c, thw), lambda i, j: (i, 0, j)),
            pl.BlockSpec((c, k_pad), lambda i, j: (0, 0)),
            pl.BlockSpec((1, k_pad), lambda i, j: (0, 0)),
        ],
        out_specs=pl.BlockSpec((tn, k_pad), lambda i, j: (i, 0)),
        scratch_shapes=[pltpu.VMEM((tn, c), jnp.float32)],
        compiler_params=pltpu.CompilerParams(
            dimension_semantics=("parallel", "arbitrary"),
            vmem_limit_bytes=vmem_limit),
        cost_estimate=cost,
    )(x_flat, w_pad, b_pad)

    return out_padded[:, :num_classes]


if __name__ == "__main__":
    # Module config: feature_channel_nums[-1] = 4, num_classes = 10, dropout_rate = 0.0.
    N, C, H, W = 2, 4, 16, 16
    NUM_CLASSES = 10

    key = jax.random.PRNGKey(0)
    kx, kw, kb = jax.random.split(key, 3)

    # features[-1] in NCHW
    x = jax.random.normal(kx, (N, C, H, W), dtype=jnp.float32)

    # Deterministic Linear params (PyTorch layout: weight (out, in), bias (out,))
    bound = 1.0 / (C ** 0.5)
    weight = jax.random.uniform(kw, (NUM_CLASSES, C), jnp.float32, -bound, bound)
    bias = jax.random.uniform(kb, (NUM_CLASSES,), jnp.float32, -bound, bound)

    logits = classification_head(x, weight, bias)
    jax.block_until_ready(logits)

    # Reference check in plain JAX (same math as the PyTorch forward).
    ref = jnp.mean(x, axis=(2, 3)) @ weight.T + bias
    assert logits.shape == (N, NUM_CLASSES)
    assert jnp.allclose(logits, ref, atol=1e-5, rtol=1e-5), "mismatch vs reference"

    print("KERNEL_OK")
</pallas_src>

<mosaic_0001>
module attributes {stable_mosaic.version = 11 : i64} {
  func.func @_head_kernel(%arg0: i32, %arg1: i32, %arg2: memref<2x4x256xf32, #tpu.memory_space<vmem>>, %arg3: memref<4x128xf32, #tpu.memory_space<vmem>>, %arg4: memref<1x128xf32, #tpu.memory_space<vmem>>, %arg5: memref<2x128xf32, #tpu.memory_space<vmem>>, %arg6: memref<2x4xf32, #tpu.memory_space<vmem>>) attributes {dimension_semantics = [#tpu.dimension_semantics<parallel>, #tpu.dimension_semantics<arbitrary>], iteration_bounds = array<i64: 1, 1>, scalar_prefetch = 0 : i64, scratch_operands = 1 : i64, tpu.core_type = #tpu.core_type<tc>, window_params = [{transform_indices = @transform_0, window_bounds = array<i64: 2, 4, 256>}, {pipeline_mode = #tpu.pipeline_mode<synchronous>, transform_indices = @transform_1, window_bounds = array<i64: 4, 128>}, {pipeline_mode = #tpu.pipeline_mode<synchronous>, transform_indices = @transform_2, window_bounds = array<i64: 1, 128>}, {transform_indices = @transform_3, window_bounds = array<i64: 2, 128>}]} {
    %c0_i32 = arith.constant 0 : i32
    %0 = arith.cmpi eq, %arg1, %c0_i32 : i32
    %1 = arith.extui %0 : i1 to i32
    %c0_i32_0 = arith.constant 0 : i32
    %2 = arith.cmpi ne, %1, %c0_i32_0 : i32
    scf.if %2 {
      %cst_9 = arith.constant 0.000000e+00 : f32
      %11 = vector.broadcast %cst_9 : f32 to vector<2x4xf32>
      %c0_10 = arith.constant 0 : index
      %c0_11 = arith.constant 0 : index
      %12 = vector.load %arg6[%c0_10, %c0_11] : memref<2x4xf32, #tpu.memory_space<vmem>>, vector<2x4xf32>
      tpu.vector_store %arg6[%c0_10, %c0_11], %11 {strides = array<i32>} : memref<2x4xf32, #tpu.memory_space<vmem>>, vector<2x4xf32>,
    } else {
    }
    %c0 = arith.constant 0 : index
    %c0_1 = arith.constant 0 : index
    %3 = vector.load %arg6[%c0, %c0_1] : memref<2x4xf32, #tpu.memory_space<vmem>>, vector<2x4xf32>
    %c0_2 = arith.constant 0 : index
    %c0_3 = arith.constant 0 : index
    %c0_4 = arith.constant 0 : index
    %4 = vector.load %arg2[%c0_2, %c0_3, %c0_4] : memref<2x4x256xf32, #tpu.memory_space<vmem>>, vector<2x4x256xf32>
    %cst = arith.constant dense<0.000000e+00> : vector<2x4xf32>
    %5 = vector.multi_reduction <add>, %4, %cst [2] : vector<2x4x256xf32> to vector<2x4xf32>
    %6 = arith.addf %3, %5 : vector<2x4xf32>
    %c0_5 = arith.constant 0 : index
    %c0_6 = arith.constant 0 : index
    %7 = vector.load %arg6[%c0_5, %c0_6] : memref<2x4xf32, #tpu.memory_space<vmem>>, vector<2x4xf32>
    tpu.vector_store %arg6[%c0_5, %c0_6], %6 {strides = array<i32>} : memref<2x4xf32, #tpu.memory_space<vmem>>, vector<2x4xf32>,
    %c0_i32_7 = arith.constant 0 : i32
    %8 = arith.cmpi eq, %arg1, %c0_i32_7 : i32
    %9 = arith.extui %8 : i1 to i32
    %c0_i32_8 = arith.constant 0 : i32
    %10 = arith.cmpi ne, %9, %c0_i32_8 : i32
    scf.if %10 {
      %c0_9 = arith.constant 0 : index
      %c0_10 = arith.constant 0 : index
      %11 = vector.load %arg6[%c0_9, %c0_10] : memref<2x4xf32, #tpu.memory_space<vmem>>, vector<2x4xf32>
      %cst_11 = arith.constant 3.906250e-03 : f32
      %12 = vector.broadcast %cst_11 : f32 to vector<2x4xf32>
      %13 = arith.mulf %11, %12 : vector<2x4xf32>
      %c0_12 = arith.constant 0 : index
      %c0_13 = arith.constant 0 : index
      %14 = vector.load %arg3[%c0_12, %c0_13] : memref<4x128xf32, #tpu.memory_space<vmem>>, vector<4x128xf32>
      %cst_14 = arith.constant dense<0.000000e+00> : vector<2x128xf32>
      %15 = tpu.matmul %13, %14, %cst_14 {dimension_numbers = #tpu.dot_dimension_numbers<[1], [0], [0], [1], [0, 0, 1, 1], [], []>} : vector<2x4xf32>, vector<4x128xf32>, vector<2x128xf32> -> vector<2x128xf32>
      %c0_15 = arith.constant 0 : index
      %c0_16 = arith.constant 0 : index
      %16 = vector.load %arg4[%c0_15, %c0_16] : memref<1x128xf32, #tpu.memory_space<vmem>>, vector<1x128xf32>
      %17 = vector.broadcast %16 : vector<1x128xf32> to vector<2x128xf32>
      %18 = arith.addf %15, %17 : vector<2x128xf32>
      %c0_17 = arith.constant 0 : index
      %c0_18 = arith.constant 0 : index
      %19 = vector.load %arg5[%c0_17, %c0_18] : memref<2x128xf32, #tpu.memory_space<vmem>>, vector<2x128xf32>
      tpu.vector_store %arg5[%c0_17, %c0_18], %18 {strides = array<i32>} : memref<2x128xf32, #tpu.memory_space<vmem>>, vector<2x128xf32>,
    } else {
    }
    return
  }
  func.func @transform_0(%arg0: i32, %arg1: i32) -> (i32, i32, i32) {
    %c0_i32 = arith.constant 0 : i32
    %c0_i32_0 = arith.constant 0 : i32
    return %arg0, %c0_i32, %arg1 : i32, i32, i32
  }
  func.func @transform_1(%arg0: i32, %arg1: i32) -> (i32, i32) {
    %c0_i32 = arith.constant 0 : i32
    %c0_i32_0 = arith.constant 0 : i32
    %c0_i32_1 = arith.constant 0 : i32
    return %c0_i32, %c0_i32_0 : i32, i32
  }
  func.func @transform_2(%arg0: i32, %arg1: i32) -> (i32, i32) {
    %c0_i32 = arith.constant 0 : i32
    %c0_i32_0 = arith.constant 0 : i32
    %c0_i32_1 = arith.constant 0 : i32
    return %c0_i32, %c0_i32_0 : i32, i32
  }
  func.func @transform_3(%arg0: i32, %arg1: i32) -> (i32, i32) {
    %c0_i32 = arith.constant 0 : i32
    %c0_i32_0 = arith.constant 0 : i32
    return %arg0, %c0_i32 : i32, i32
  }
}

</mosaic_0001>

<bundles_post_ra>
// kernel: tpu_custom_call.1
= control target key start
LH: loop header
LB: loop body
LE: loop exit
PB: predicated region body
PF: predicated region fallthrough
CT: control target
= control target key end

     0   :  { %8 = vsyncpa [#allocation4], 0  ;;  %s323_s0 = inlined_call_operand.hbm [shape: f32[2,4,256], index: 0, kind: input, shape index: {}]   ;;  %s324_s1 = inlined_call_operand.hbm [shape: f32[4,128], index: 1, kind: input, shape index: {}]   ;;  %s325_s2 = inlined_call_operand.vmem [shape: f32[1,128], index: 2, kind: input, shape index: {}]   ;;  %s326_s3 = inlined_call_operand.hbm [shape: f32[2,128], index: 3, kind: output, shape index: {}]  }
   0x1   :  { %9 = vsyncpa [#allocation7], 0 }
   0x2   :  { %10 = vsyncpa [#allocation5], 0  ;;  %s277_s12 = smov [#allocation3]  }
   0x3   :  { %s16_s13 = sshll.u32 %s277_s12, 4  ;;  %s17_s13 = int_to_ptr.vmem [resolvable:$true] %s16_s13 }
   0x4   :  { %s219_s14 = scalar_lea.vmem %s17_s13, 256  ;;  %p224_p1 = scmp.lt.s32.totalorder %s17_s13, %s17_s13 }
   0x5   :  { %p220_p0 = scmp.ne.s32.totalorder %s17_s13, %s219_s14  ;;  %p225_p2 = scmp.lt.s32.totalorder %s219_s14, %s219_s14 }
   0x7   :  { %p226_p3 = por %p225_p2, %p224_p1 }
   0x9   :  { %p227_p4 = pnand %p226_p3, %p220_p0 }
   0xb   :  { %230 = shalt.err (!%p227_p4)
}
   0xc   :  { %s278_s15 = smov 128   ;;  %s279_s16 = smov 8  }
   0xd   :  { %22 = dma.hbm_to_vmem [thread:$0]  %s323_s0, 256, %s17_s13, [#allocation4], %s278_s15, %s278_s15, %s279_s16  }
   0xe   :  { %s280_s19 = smov [#allocation6]  }
   0xf   :  { %s29_s20 = sshll.u32 %s280_s19, 4  ;;  %s30_s20 = int_to_ptr.vmem [resolvable:$true] %s29_s20 }
  0x10   :  { %s239_s21 = scalar_lea.vmem %s30_s20, 64  ;;  %p244_p6 = scmp.lt.s32.totalorder %s30_s20, %s30_s20 }
  0x11   :  { %p240_p5 = scmp.ne.s32.totalorder %s30_s20, %s239_s21  ;;  %p245_p7 = scmp.lt.s32.totalorder %s239_s21, %s239_s21 }
  0x13   :  { %p246_p8 = por %p245_p7, %p244_p6 }
  0x15   :  { %p247_p9 = pnand %p246_p8, %p240_p5 }
  0x17   :  { %250 = shalt.err (!%p247_p9)
}
  0x18   :  { %32 = dma.hbm_to_vmem [thread:$0]  %s324_s1, 64, %s30_s20, [#allocation7]  }
  0x19   :  { %271 = dma.done.wait [#allocation4], 256  }
  0x1a   :  { %272 = vsyncadd [#allocation4], 4294967040 }
  0x1b   :  { %273 = dma.done.wait [#allocation7], 64  }
  0x1c   :  { %274 = vsyncadd [#allocation7], 4294967232  ;;  %vm56_vm0 = vcmask 1043456   ;;  %v48_v0 = vld [vmem:[#allocation3] sm:$0xff]  ;;  %v49_v1 = vld [vmem:[#allocation3 + $0x8] sm:$0xff]  ;;  %vm45_vm1 = vcmask 25600   ;;  %v69_v12 = vlaneseq }
  0x1d   :  { %v52_v2 = vcombine.high %v48_v0, %v48_v0  ;;  %v57_v3 = vsel %vm56_vm0, %v48_v0, 0.0  ;;  %v53_v4 = vcombine.high %v49_v1, %v49_v1  ;;  %v62_v6 = vsel %vm56_vm0, %v49_v1, 0.0  ;;  %v90_v11 = vld [vmem:[#allocation6] sm:$0xf]  ;;  %v192_v25 = vld [vmem:[%s325_s2] ss:$0 sm:$0xff] }
  0x1e   :  { %v281_v10 = vmov 0.0   ;;  %vm282_vm2 = vmmov 0   ;;  %v70_v13 = vand.u32 127, %v69_v12  ;;  %v72_v14 = vshrl.u32 %v69_v12, 7  ;;  %s283_s24 = smov [#allocation8]  }
  0x1f   :  { %v58_v5 = vsel %vm56_vm0, %v52_v2, 0.0  ;;  %v63_v7 = vsel %vm56_vm0, %v53_v4, 0.0  ;;  %46 = vst.msk [vmem:[#allocation2] sm:$0x3] %vm45_vm1, %v281_v10  ;;  %197 = vmatprep.subr.mxu0 %v281_v10  ;;  %199 = vmatprep.mubr.msk.f32.mxu0 %vm282_vm2, %v281_v10  ;;  %vm79_vm3 = vcmask 1041409   ;;  %vm98_vm4 = vcmask 31744  }
  0x20   :  { %v59_v8 = vadd.f32 %v58_v5, %v57_v3  ;;  %v64_v9 = vadd.f32 %v63_v7, %v62_v6  ;;  %198 = vmatpush3.msk.msra.mxu0 %vm56_vm0, %v90_v11  ;;  %v73_v16 = vsub.s32 %v70_v13, %v72_v14  ;;  %s182_s25 = sshll.u32 %s283_s24, 4  ;;  %s183_s25 = int_to_ptr.vmem [resolvable:$true] %s182_s25 }
  0x21   :  { %s251_s26 = scalar_lea.vmem %s183_s25, 32  ;;  %p256_p11 = scmp.lt.s32.totalorder %s183_s25, %s183_s25 }
  0x22   :  { %60 = vadd.xlane.f32.xlu0 %v59_v8  ;;  %p252_p10 = scmp.ne.s32.totalorder %s183_s25, %s251_s26  ;;  %p257_p12 = scmp.lt.s32.totalorder %s251_s26, %s251_s26 }
  0x24   :  { %p258_p13 = por %p257_p12, %p256_p11 }
  0x26   :  { %65 = vadd.xlane.f32.xlu0 %v64_v9  ;;  %v47_v20 = vld [vmem:[#allocation2] sm:$0x3]  ;;  %p259_p0 = pnand %p258_p13, %p252_p10 }
  0xab   :  { %v61_v15 = vpop.xlane.xlu0 %60 }
  0xac   :  { %v74_v18 = vrot.slane %v61_v15, %v73_v16 }
  0xaf   :  { %v66_v17 = vpop.xlane.xlu0 %65 }
  0xb0   :  { %v78_v19 = vrot.slane %v66_v17, %v73_v16 }
  0xb2   :  { %v80_v21 = vsel %vm79_vm3, %v78_v19, %v74_v18 }
  0xb3   :  { %v82_v22 = vadd.f32 %v80_v21, %v47_v20 }
  0xb5   :  { %84 = vst.msk [vmem:[#allocation2] sm:$0x3] %vm45_vm1, %v82_v22 }
  0xbc   :  { %v88_v23 = vld [vmem:[#allocation2] sm:$0x3] }
  0xbd   :  { %v89_v24 = vmul.f32 0.00390625, %v88_v23 }
  0xbf   :  { %200 = vmatmul.mubr.msk.f32.vlgmr.msra.gmra.mxu0 %vm98_vm4, %v89_v24 }
 0x17f   :  { %v171_v26 = vpop.f32.mrf.mxu0 }
 0x180   :  { %v172_v27 = vadd.f32 %v192_v25, %v171_v26 }
 0x181   :  { %v201_v28 = vpop.f32.mrf.mxu0 }
 0x182   :  { %175 = vst [vmem:[#allocation8] sm:$0x3] %v172_v27 }
 0x183   :  { %262 = shalt.err (!%p259_p0)
}
 0x184   :  { %185 = dma.vmem_to_hbm [thread:$0]  %s183_s25, 32, %s326_s3, [#allocation5]  }
 0x185   :  { %275 = dma.done.wait [#allocation5], 32  }
 0x186   :  { %276 = vsyncadd [#allocation5], 4294967264 }
 0x187   :  { %189 = vsyncpa [#allocation4], 1 }
 0x188   :  { %190 = vsyncpa [#allocation7], 1 }
 0x189   :  { %191 = vsyncpa [#allocation5], 1 }

</bundles_post_ra>
